<compile_context>
chip_gen: v5e
topology: v5e:2x2
jax: 0.10.0
libtpu: 0.0.40
codegen_flags: <defaults>
</compile_context>

<pallas_src>
import jax
import jax.numpy as jnp
from jax.experimental import pallas as pl
from jax.experimental.pallas import tpu as pltpu


def _round_up(n: int, m: int) -> int:
    return ((n + m - 1) // m) * m


def _make_linear_hardsigmoid_kernel(in_features: int):
    """out.T = clamp(W'.T @ x.T + b', 0, 1) with a lane-dense batch axis."""

    def kernel(xT_ref, wT_ref, b_ref, oT_ref):
        xT = xT_ref[...].astype(jnp.float32)    # (IN, TILE)  batch on lanes
        wT = wT_ref[...].astype(jnp.float32)    # (OUT, IN)
        acc = b_ref[...].astype(jnp.float32)    # (OUT, 1) -> broadcasts to (OUT, TILE)
        # Unrolled VPU contraction over the tiny static K dimension (K = 3):
        # sublane-broadcast weight column * lane-dense activation row.
        for k in range(in_features):
            acc = acc + wT[:, k:k + 1] * xT[k:k + 1, :]
        # +3 and /6 already folded into W'/b' on the host -> clamp to [0, 1].
        oT_ref[...] = jnp.minimum(jnp.maximum(acc, 0.0), 1.0).astype(oT_ref.dtype)

    return kernel


def linear_hardsigmoid(x, w, b, *, tile_b: int = 2048):
    """x: (B, IN) f32, w: (IN, OUT) f32, b: (OUT,) f32 -> (B, OUT) f32.

    Computes clamp(x @ w + b + 3, 0, 6) / 6 (PyTorch hardsigmoid of a Linear).
    """
    B, IN = x.shape
    OUT = w.shape[1]

    # Host-side constant folding (constant under jit):
    #   clamp(xW + b + 3, 0, 6)/6 == clamp(x(W/6) + (b+3)/6, 0, 1)
    wT_s = (w.astype(jnp.float32) / 6.0).T                        # (OUT, IN)
    b_s = ((b.astype(jnp.float32) + 3.0) / 6.0).reshape(OUT, 1)   # (OUT, 1)

    # Lane-dense tiling of the batch axis: tile is a multiple of 128,
    # batch is zero-padded up to grid_n * lane_tile (padding sliced off below).
    lane_tile = _round_up(max(128, min(tile_b, _round_up(B, 128))), 128)
    grid_n = pl.cdiv(B, lane_tile)
    b_pad = grid_n * lane_tile

    x_f32 = x.astype(jnp.float32)
    if b_pad != B:
        x_f32 = jnp.pad(x_f32, ((0, b_pad - B), (0, 0)))
    xT = x_f32.T                                                   # (IN, B_pad)

    outT = pl.pallas_call(
        _make_linear_hardsigmoid_kernel(IN),
        out_shape=jax.ShapeDtypeStruct((OUT, b_pad), jnp.float32),
        grid=(grid_n,),
        in_specs=[
            pl.BlockSpec((IN, lane_tile), lambda i: (0, i)),   # lane-dense input
            pl.BlockSpec((OUT, IN), lambda i: (0, 0)),         # replicated weights
            pl.BlockSpec((OUT, 1), lambda i: (0, 0)),          # replicated bias
        ],
        out_specs=pl.BlockSpec((OUT, lane_tile), lambda i: (0, i)),
        compiler_params=pltpu.CompilerParams(
            dimension_semantics=("parallel",),
        ),
    )(xT, wT_s, b_s)

    return outT[:, :B].T


def reference(x, w, b):
    a1 = x @ w + b
    return jnp.clip(a1 + 3.0, 0.0, 6.0) / 6.0


if __name__ == "__main__":
    key = jax.random.PRNGKey(0)
    k_x, k_w, k_b, k_big = jax.random.split(key, 4)

    IN_FEATURES, OUT_FEATURES = 3, 8
    BATCH = 1  # matches the module's x2 = torch.randn(1, 3)

    # Deterministic parameter init (mimics nn.Linear uniform init bounds).
    bound = 1.0 / (IN_FEATURES ** 0.5)
    w = jax.random.uniform(k_w, (IN_FEATURES, OUT_FEATURES),
                           minval=-bound, maxval=bound, dtype=jnp.float32)
    b = jax.random.uniform(k_b, (OUT_FEATURES,),
                           minval=-bound, maxval=bound, dtype=jnp.float32)
    x2 = jax.random.normal(k_x, (BATCH, IN_FEATURES), dtype=jnp.float32)

    # --- module-sized run (B=1 -> single (8, 128) lane-dense block) ---
    out = jax.block_until_ready(linear_hardsigmoid(x2, w, b))
    ref = reference(x2, w, b)
    assert out.shape == (BATCH, OUT_FEATURES)
    assert jnp.allclose(out, ref, atol=1e-5, rtol=1e-5)

    # --- batched path: multi-step parallel grid + non-divisible tail padding ---
    x_big = jax.random.normal(k_big, (1000, IN_FEATURES), dtype=jnp.float32)
    out_big = jax.block_until_ready(linear_hardsigmoid(x_big, w, b, tile_b=256))
    assert out_big.shape == (1000, OUT_FEATURES)
    assert jnp.allclose(out_big, reference(x_big, w, b), atol=1e-5, rtol=1e-5)

    print("KERNEL_OK")
</pallas_src>

<mosaic_0001>
module attributes {stable_mosaic.version = 11 : i64} {
  func.func @kernel(%arg0: i32, %arg1: memref<3x128xf32, #tpu.memory_space<vmem>>, %arg2: memref<8x3xf32, #tpu.memory_space<vmem>>, %arg3: memref<8x1xf32, #tpu.memory_space<vmem>>, %arg4: memref<8x128xf32, #tpu.memory_space<vmem>>) attributes {dimension_semantics = [#tpu.dimension_semantics<parallel>], iteration_bounds = array<i64: 1>, scalar_prefetch = 0 : i64, scratch_operands = 0 : i64, tpu.core_type = #tpu.core_type<tc>, window_params = [{transform_indices = @transform_0, window_bounds = array<i64: 3, 128>}, {pipeline_mode = #tpu.pipeline_mode<synchronous>, transform_indices = @transform_1, window_bounds = array<i64: 8, 3>}, {pipeline_mode = #tpu.pipeline_mode<synchronous>, transform_indices = @transform_2, window_bounds = array<i64: 8, 1>}, {transform_indices = @transform_3, window_bounds = array<i64: 8, 128>}]} {
    %c0 = arith.constant 0 : index
    %c0_0 = arith.constant 0 : index
    %0 = vector.load %arg1[%c0, %c0_0] : memref<3x128xf32, #tpu.memory_space<vmem>>, vector<3x128xf32>
    %c0_1 = arith.constant 0 : index
    %c0_2 = arith.constant 0 : index
    %1 = vector.load %arg2[%c0_1, %c0_2] : memref<8x3xf32, #tpu.memory_space<vmem>>, vector<8x3xf32>
    %c0_3 = arith.constant 0 : index
    %c0_4 = arith.constant 0 : index
    %2 = vector.load %arg3[%c0_3, %c0_4] : memref<8x1xf32, #tpu.memory_space<vmem>>, vector<8x1xf32>
    %3 = vector.extract_strided_slice %1 {offsets = [0, 0], sizes = [8, 1], strides = [1, 1]} : vector<8x3xf32> to vector<8x1xf32>
    %4 = vector.extract_strided_slice %0 {offsets = [0, 0], sizes = [1, 128], strides = [1, 1]} : vector<3x128xf32> to vector<1x128xf32>
    %5 = vector.broadcast %3 : vector<8x1xf32> to vector<8x128xf32>
    %6 = vector.broadcast %4 : vector<1x128xf32> to vector<8x128xf32>
    %7 = arith.mulf %5, %6 : vector<8x128xf32>
    %8 = vector.broadcast %2 : vector<8x1xf32> to vector<8x128xf32>
    %9 = arith.addf %8, %7 : vector<8x128xf32>
    %10 = vector.extract_strided_slice %1 {offsets = [0, 1], sizes = [8, 1], strides = [1, 1]} : vector<8x3xf32> to vector<8x1xf32>
    %11 = vector.extract_strided_slice %0 {offsets = [1, 0], sizes = [1, 128], strides = [1, 1]} : vector<3x128xf32> to vector<1x128xf32>
    %12 = vector.broadcast %10 : vector<8x1xf32> to vector<8x128xf32>
    %13 = vector.broadcast %11 : vector<1x128xf32> to vector<8x128xf32>
    %14 = arith.mulf %12, %13 : vector<8x128xf32>
    %15 = arith.addf %9, %14 : vector<8x128xf32>
    %16 = vector.extract_strided_slice %1 {offsets = [0, 2], sizes = [8, 1], strides = [1, 1]} : vector<8x3xf32> to vector<8x1xf32>
    %17 = vector.extract_strided_slice %0 {offsets = [2, 0], sizes = [1, 128], strides = [1, 1]} : vector<3x128xf32> to vector<1x128xf32>
    %18 = vector.broadcast %16 : vector<8x1xf32> to vector<8x128xf32>
    %19 = vector.broadcast %17 : vector<1x128xf32> to vector<8x128xf32>
    %20 = arith.mulf %18, %19 : vector<8x128xf32>
    %21 = arith.addf %15, %20 : vector<8x128xf32>
    %cst = arith.constant 0.000000e+00 : f32
    %22 = vector.broadcast %cst : f32 to vector<8x128xf32>
    %23 = arith.maximumf %21, %22 : vector<8x128xf32>
    %cst_5 = arith.constant 1.000000e+00 : f32
    %24 = vector.broadcast %cst_5 : f32 to vector<8x128xf32>
    %25 = arith.minimumf %23, %24 : vector<8x128xf32>
    %c0_6 = arith.constant 0 : index
    %c0_7 = arith.constant 0 : index
    %26 = vector.load %arg4[%c0_6, %c0_7] : memref<8x128xf32, #tpu.memory_space<vmem>>, vector<8x128xf32>
    tpu.vector_store %arg4[%c0_6, %c0_7], %25 {strides = array<i32>} : memref<8x128xf32, #tpu.memory_space<vmem>>, vector<8x128xf32>,
    return
  }
  func.func @transform_0(%arg0: i32) -> (i32, i32) {
    %c0_i32 = arith.constant 0 : i32
    %c0_i32_0 = arith.constant 0 : i32
    return %c0_i32, %arg0 : i32, i32
  }
  func.func @transform_1(%arg0: i32) -> (i32, i32) {
    %c0_i32 = arith.constant 0 : i32
    %c0_i32_0 = arith.constant 0 : i32
    %c0_i32_1 = arith.constant 0 : i32
    return %c0_i32, %c0_i32_0 : i32, i32
  }
  func.func @transform_2(%arg0: i32) -> (i32, i32) {
    %c0_i32 = arith.constant 0 : i32
    %c0_i32_0 = arith.constant 0 : i32
    %c0_i32_1 = arith.constant 0 : i32
    return %c0_i32, %c0_i32_0 : i32, i32
  }
  func.func @transform_3(%arg0: i32) -> (i32, i32) {
    %c0_i32 = arith.constant 0 : i32
    %c0_i32_0 = arith.constant 0 : i32
    return %c0_i32, %arg0 : i32, i32
  }
}

</mosaic_0001>

<bundles_post_ra>
// kernel: tpu_custom_call.1
= control target key start
LH: loop header
LB: loop body
LE: loop exit
PB: predicated region body
PF: predicated region fallthrough
CT: control target
= control target key end

     0   :  { %v98_v1 = vmov 0   ;;  %v99_v2 = vmov 1   ;;  %s134_s0 = inlined_call_operand.vmem [shape: f32[3,128], index: 0, kind: input, shape index: {}]   ;;  %s135_s1 = inlined_call_operand.vmem [shape: f32[8,3], index: 1, kind: input, shape index: {}]   ;;  %s136_s2 = inlined_call_operand.vmem [shape: f32[8,1], index: 2, kind: input, shape index: {}]   ;;  %s137_s3 = inlined_call_operand.hbm [shape: f32[8,128], index: 3, kind: output, shape index: {}]  }
   0x1   :  { %v16_v0 = vld [vmem:[%s135_s1] sm:$0xff]  ;;  %68 = vset.pattern.permute.xlu0 %v98_v1  ;;  %69 = vset.pattern.permute.xlu1 %v99_v2 }
   0x2   :  { %8 = vsyncpa [#allocation3], 0  ;;  %20 = vperm.xlu0 %68, %v16_v0   ;;  %32 = vperm.xlu1 %69, %v16_v0   ;;  %v17_v3 = vld [vmem:[%s136_s2] sm:$0xff]  ;;  %v100_v4 = vmov 2   ;;  %s101_s1 = smov [#allocation2]   ;;  %s55_s20 = sshll.u32 %s137_s3, 4  ;;  %s56_s20 = int_to_ptr.hbm [resolvable:$true] %s55_s20 }
   0x3   :  { %v15_v6 = vld [vmem:[%s134_s0] sm:$0x7]  ;;  %s53_s2 = sshll.u32 %s101_s1, 4  ;;  %s54_s2 = int_to_ptr.vmem [resolvable:$true] %s53_s2 }
   0x4   :  { %v23_v8 = vperm.slane %v15_v6, 0  ;;  %v35_v9 = vperm.slane %v15_v6, 1  ;;  %v42_v10 = vperm.slane %v15_v6, 2 }
   0xa   :  { %27 = vperm.xlu0 %68, %v17_v3   ;;  %70 = vset.pattern.permute.xlu1 %v100_v4 }
   0xb   :  { %39 = vperm.xlu1 %70, %v16_v0  }
  0x12   :  { %71 = vset.pattern.permute.xlu0 %v100_v4 }
  0x74   :  { %v21_v5 = vpop.permute.xlu0 %20  ;;  %v33_v7 = vpop.permute.xlu1 %32 }
  0x75   :  { %v24_v11 = vmul.f32 %v23_v8, %v21_v5  ;;  %v36_v13 = vmul.f32 %v35_v9, %v33_v7 }
  0x7c   :  { %v28_v12 = vpop.permute.xlu0 %27 }
  0x7d   :  { %v30_v14 = vadd.f32 %v28_v12, %v24_v11  ;;  %v40_v15 = vpop.permute.xlu1 %39 }
  0x7e   :  { %v43_v16 = vmul.f32 %v42_v10, %v40_v15 }
  0x7f   :  { %v37_v17 = vadd.f32 %v36_v13, %v30_v14 }
  0x81   :  { %v44_v18 = vadd.f32 %v43_v16, %v37_v17 }
  0x83   :  { %v45_v19 = vmax.f32 %v44_v18, 0.0 }
  0x85   :  { %v46_v20 = vmin.f32 %v45_v19, 1.0 }
  0x87   :  { %47 = vst [vmem:[#allocation2] sm:$0xff] %v46_v20 }
  0x88   :  { %58 = dma.vmem_to_hbm [thread:$0]  %s54_s2, 128, %s56_s20, [#allocation3]  }
  0x89   :  { %96 = dma.done.wait [#allocation3], 128  }
  0x8a   :  { %97 = vsyncadd [#allocation3], 4294967168 }
  0x8b   :  { %63 = vsyncpa [#allocation3], 1 }

</bundles_post_ra>
